<compile_context>
chip_gen: v5e
topology: v5e:2x2
jax: 0.10.0
libtpu: 0.0.40
codegen_flags: <defaults>
</compile_context>

<pallas_src>
import math
import numpy as np
import jax
import jax.numpy as jnp
from jax.experimental import pallas as pl
from jax.experimental.pallas import tpu as pltpu


def _dft_mats_np(n):
    """cos / sin parts of the n x n DFT matrix exp(-2*pi*i*u*k/n), float64."""
    k = np.arange(n, dtype=np.int64)
    kk = np.mod(np.outer(k, k), n).astype(np.float64)   # exact mod-n reduction
    ang = -2.0 * np.pi * kk / float(n)
    return np.cos(ang), np.sin(ang)


def _mxu_width():
    """Native MXU tile width: 256 on v6e/v7x, 128 on older chips (safe default)."""
    try:
        kind = jax.devices()[0].device_kind.lower()
        if "v6" in kind or "v7" in kind:
            return 256
    except Exception:
        pass
    return 128


def _hf_loss_kernel(x_ref, a_ref, wr_ref, wi_ref, o_ref):
    i = pl.program_id(1)

    @pl.when(i == 0)
    def _():
        o_ref[...] = jnp.zeros_like(o_ref)

    x = x_ref[0].astype(jnp.bfloat16)                    # (PH, LW)
    ph, lw = x.shape

    # Stage 1 (fused cos/sin, block-diagonal over the P stacked slabs):
    #   [yr; yi] = [kron(I_P, Hcos); kron(I_P, Hsin)] @ X        -> (2*PH, LW)
    y = jnp.dot(a_ref[...], x, preferred_element_type=jnp.float32)
    yb = y.astype(jnp.bfloat16)                          # single recast

    # Stage 2 (block-diagonal over the L lane-packed images):
    #   g1 = [yr; yi] @ Wcos ;  g2 = [yr; yi] @ Wsin             -> (2*PH, LW)
    g1 = jnp.dot(yb, wr_ref[...], preferred_element_type=jnp.float32)
    g2 = jnp.dot(yb, wi_ref[...], preferred_element_type=jnp.float32)

    # fr = yr@Wc - yi@Ws ; fi = yr@Ws + yi@Wc   (sublane slices at PH, mult of 8)
    fr = g1[:ph] - g2[ph:]
    fi = g2[:ph] + g1[ph:]
    mag = jnp.sqrt(fr * fr + fi * fi)                    # (PH, LW) f32, EUP sqrt

    # Sublane-reduce the per-step |F| tile and accumulate into the small
    # resident (8, LW) output block; cross-lane reduce happens once, outside.
    part = mag.reshape(ph // 8, 8, lw).sum(axis=0)       # (8, LW)
    o_ref[...] += part[None]


def high_frequency_loss(x):
    """x: (B, C, H, W) float -> scalar float32 loss == abs(fft2(x)).mean()."""
    B, C, H, W = x.shape
    N = B * C
    total = float(B * C * H * W)
    mxu = _mxu_width()

    if x.dtype != jnp.float32 and x.dtype != jnp.bfloat16:
        x = x.astype(jnp.float32)

    # Lane batch: pack L images along lanes so the slab minor dim fills the MXU.
    L = max(1, mxu // W) if W < mxu else 1
    LW = L * W

    # Sublane batch: stack P slabs so the stage-1 contraction fills the MXU K
    # width, keeping P*H a multiple of 8 (sublane tile) and not padding far
    # beyond the real amount of work.
    g_real = -(-N // L)                                  # slabs actually needed
    p_cap = max(1, mxu // H)
    p_step = 8 // math.gcd(H, 8)
    P = min(p_cap, g_real)
    P = max(p_step, (P // p_step) * p_step)
    PH = P * H

    nsteps = -(-g_real // P)
    NC = 2 if nsteps >= 2 else 1                         # v7x: one group per TC
    nsteps = -(-nsteps // NC) * NC
    Gper = nsteps // NC
    Gtot = nsteps * P
    Npad = Gtot * L

    # Input prep: only materialize a copy when lane packing or padding is
    # actually required; cast to bf16 BEFORE that copy.  Otherwise feed the
    # input through as a pure reshape view and cast in-kernel.
    need_pack = L > 1
    need_pad = Npad != N
    if not need_pack and not need_pad:
        xt = x.reshape(nsteps, PH, LW)
    else:
        xb = x.astype(jnp.bfloat16).reshape(N, H, W)
        if need_pad:
            xb = jnp.concatenate(
                [xb, jnp.zeros((Npad - N, H, W), jnp.bfloat16)], axis=0)
        xt = (xb.reshape(Gtot, L, H, W)
                .transpose(0, 2, 1, 3)                   # lane-dense slabs
                .reshape(nsteps, PH, LW))

    # DFT matrices (float64 host build, bf16 on device).
    hr, hi = _dft_mats_np(H)                             # (H, H)
    wr, wi = _dft_mats_np(W)                             # (W, W)
    eye_p = np.eye(P, dtype=np.float64)
    a_np = np.concatenate([np.kron(eye_p, hr), np.kron(eye_p, hi)], axis=0)
    if L > 1:
        eye_l = np.eye(L, dtype=np.float64)
        wr = np.kron(eye_l, wr)
        wi = np.kron(eye_l, wi)
    a_mat = jnp.asarray(a_np.astype(np.float32), dtype=jnp.bfloat16)   # (2PH, PH)
    wr_mat = jnp.asarray(wr.astype(np.float32), dtype=jnp.bfloat16)    # (LW, LW)
    wi_mat = jnp.asarray(wi.astype(np.float32), dtype=jnp.bfloat16)    # (LW, LW)

    # VMEM budget (v7x has 64 MiB physical): x block + DFT mats double-buffered
    # plus the f32 stage intermediates.
    x_bytes = xt.dtype.itemsize
    est = (2 * PH * LW * x_bytes                          # x block, 2 buffers
           + 2 * (2 * PH * PH + 2 * LW * LW) * 2          # DFT mats, 2 buffers
           + (2 * PH * LW) * (4 + 2)                      # y f32 + bf16 recast
           + 2 * (2 * PH * LW) * 4                        # g1, g2
           + 3 * PH * LW * 4                              # fr, fi, mag
           + 8 * LW * 4)                                  # resident output block
    vmem_limit = int(min(48 * 2**20, max(32 * 2**20, 2 * est)))
    # TODO(synk): for very large H, W (>= ~1024) the f32 intermediates above
    # exceed scoped VMEM; tile the W-transform over lane chunks in that regime.

    steps = NC * Gper
    flops = steps * (2 * (2 * PH) * PH * LW + 2 * (2 * (2 * PH) * LW * LW))
    transc = steps * PH * LW
    bytes_acc = int(xt.size * x_bytes
                    + (a_mat.size + wr_mat.size + wi_mat.size) * 2
                    + NC * 8 * LW * 4)
    cost = pl.CostEstimate(flops=int(flops), transcendentals=int(transc),
                           bytes_accessed=bytes_acc)

    partial = pl.pallas_call(
        _hf_loss_kernel,
        out_shape=jax.ShapeDtypeStruct((NC, 8, LW), jnp.float32),
        grid_spec=pltpu.PrefetchScalarGridSpec(
            num_scalar_prefetch=0,
            grid=(NC, Gper),
            in_specs=[
                pl.BlockSpec((1, PH, LW), lambda c, i: (c * Gper + i, 0, 0)),
                pl.BlockSpec((2 * PH, PH), lambda c, i: (0, 0)),
                pl.BlockSpec((LW, LW), lambda c, i: (0, 0)),
                pl.BlockSpec((LW, LW), lambda c, i: (0, 0)),
            ],
            out_specs=pl.BlockSpec((1, 8, LW), lambda c, i: (c, 0, 0)),
        ),
        compiler_params=pltpu.CompilerParams(
            dimension_semantics=("parallel", "arbitrary"),
            vmem_limit_bytes=vmem_limit),
        cost_estimate=cost,
    )(xt, a_mat, wr_mat, wi_mat)

    # Single cross-lane reduce + mean normalization (padded images are 0).
    return (jnp.sum(partial) / total).astype(jnp.float32)


if __name__ == "__main__":
    key = jax.random.PRNGKey(0)
    B, C, H, W = 2, 4, 16, 16
    x = jax.random.normal(key, (B, C, H, W), dtype=jnp.float32)

    loss = jax.block_until_ready(high_frequency_loss(x))

    # Reference: same math via jnp.fft (matches torch.fft.fftn + abs().mean()).
    ref = jnp.abs(jnp.fft.fftn(x, axes=(2, 3))).mean()
    np.testing.assert_allclose(np.array(loss), np.array(ref),
                               rtol=5e-2, atol=5e-2)

    print("KERNEL_OK")
</pallas_src>

<mosaic_0001>
module attributes {stable_mosaic.version = 11 : i64} {
  func.func @_hf_loss_kernel(%arg0: i32, %arg1: i32, %arg2: memref<1x16x128xbf16, #tpu.memory_space<vmem>>, %arg3: memref<32x16xbf16, #tpu.memory_space<vmem>>, %arg4: memref<128x128xbf16, #tpu.memory_space<vmem>>, %arg5: memref<128x128xbf16, #tpu.memory_space<vmem>>, %arg6: memref<1x8x128xf32, #tpu.memory_space<vmem>>) attributes {dimension_semantics = [#tpu.dimension_semantics<parallel>, #tpu.dimension_semantics<arbitrary>], iteration_bounds = array<i64: 1, 1>, scalar_prefetch = 0 : i64, scratch_operands = 0 : i64, tpu.core_type = #tpu.core_type<tc>, window_params = [{transform_indices = @transform_0, window_bounds = array<i64: 1, 16, 128>}, {pipeline_mode = #tpu.pipeline_mode<synchronous>, transform_indices = @transform_1, window_bounds = array<i64: 32, 16>}, {pipeline_mode = #tpu.pipeline_mode<synchronous>, transform_indices = @transform_2, window_bounds = array<i64: 128, 128>}, {pipeline_mode = #tpu.pipeline_mode<synchronous>, transform_indices = @transform_3, window_bounds = array<i64: 128, 128>}, {transform_indices = @transform_4, window_bounds = array<i64: 1, 8, 128>}]} {
    %c0_i32 = arith.constant 0 : i32
    %0 = arith.cmpi eq, %arg1, %c0_i32 : i32
    %1 = arith.extui %0 : i1 to i32
    %c0_i32_0 = arith.constant 0 : i32
    %2 = arith.cmpi ne, %1, %c0_i32_0 : i32
    scf.if %2 {
      %cst_18 = arith.constant 0.000000e+00 : f32
      %28 = vector.broadcast %cst_18 : f32 to vector<1x8x128xf32>
      %c0_19 = arith.constant 0 : index
      %c0_20 = arith.constant 0 : index
      %c0_21 = arith.constant 0 : index
      %29 = vector.load %arg6[%c0_19, %c0_20, %c0_21] : memref<1x8x128xf32, #tpu.memory_space<vmem>>, vector<1x8x128xf32>
      tpu.vector_store %arg6[%c0_19, %c0_20, %c0_21], %28 {strides = array<i32>} : memref<1x8x128xf32, #tpu.memory_space<vmem>>, vector<1x8x128xf32>,
    } else {
    }
    %c0 = arith.constant 0 : index
    %c0_1 = arith.constant 0 : index
    %c0_2 = arith.constant 0 : index
    %3 = vector.load %arg2[%c0, %c0_1, %c0_2] : memref<1x16x128xbf16, #tpu.memory_space<vmem>>, vector<1x16x128xbf16>
    %4 = vector.shape_cast %3 : vector<1x16x128xbf16> to vector<16x128xbf16>
    %c0_3 = arith.constant 0 : index
    %c0_4 = arith.constant 0 : index
    %5 = vector.load %arg3[%c0_3, %c0_4] : memref<32x16xbf16, #tpu.memory_space<vmem>>, vector<32x16xbf16>
    %cst = arith.constant dense<0.000000e+00> : vector<32x128xf32>
    %6 = tpu.matmul %5, %4, %cst {dimension_numbers = #tpu.dot_dimension_numbers<[1], [0], [0], [1], [0, 0, 1, 1], [], []>} : vector<32x16xbf16>, vector<16x128xbf16>, vector<32x128xf32> -> vector<32x128xf32>
    %7 = arith.truncf %6 : vector<32x128xf32> to vector<32x128xbf16>
    %c0_5 = arith.constant 0 : index
    %c0_6 = arith.constant 0 : index
    %8 = vector.load %arg4[%c0_5, %c0_6] : memref<128x128xbf16, #tpu.memory_space<vmem>>, vector<128x128xbf16>
    %cst_7 = arith.constant dense<0.000000e+00> : vector<32x128xf32>
    %9 = tpu.matmul %7, %8, %cst_7 {dimension_numbers = #tpu.dot_dimension_numbers<[1], [0], [0], [1], [0, 0, 1, 1], [], []>} : vector<32x128xbf16>, vector<128x128xbf16>, vector<32x128xf32> -> vector<32x128xf32>
    %c0_8 = arith.constant 0 : index
    %c0_9 = arith.constant 0 : index
    %10 = vector.load %arg5[%c0_8, %c0_9] : memref<128x128xbf16, #tpu.memory_space<vmem>>, vector<128x128xbf16>
    %cst_10 = arith.constant dense<0.000000e+00> : vector<32x128xf32>
    %11 = tpu.matmul %7, %10, %cst_10 {dimension_numbers = #tpu.dot_dimension_numbers<[1], [0], [0], [1], [0, 0, 1, 1], [], []>} : vector<32x128xbf16>, vector<128x128xbf16>, vector<32x128xf32> -> vector<32x128xf32>
    %12 = vector.extract_strided_slice %9 {offsets = [0, 0], sizes = [16, 128], strides = [1, 1]} : vector<32x128xf32> to vector<16x128xf32>
    %13 = vector.extract_strided_slice %11 {offsets = [16, 0], sizes = [16, 128], strides = [1, 1]} : vector<32x128xf32> to vector<16x128xf32>
    %14 = arith.subf %12, %13 : vector<16x128xf32>
    %15 = vector.extract_strided_slice %11 {offsets = [0, 0], sizes = [16, 128], strides = [1, 1]} : vector<32x128xf32> to vector<16x128xf32>
    %16 = vector.extract_strided_slice %9 {offsets = [16, 0], sizes = [16, 128], strides = [1, 1]} : vector<32x128xf32> to vector<16x128xf32>
    %17 = arith.addf %15, %16 : vector<16x128xf32>
    %18 = arith.mulf %14, %14 : vector<16x128xf32>
    %19 = arith.mulf %17, %17 : vector<16x128xf32>
    %20 = arith.addf %18, %19 : vector<16x128xf32>
    %21 = math.sqrt %20 : vector<16x128xf32>
    %22 = vector.shape_cast %21 : vector<16x128xf32> to vector<2x8x128xf32>
    %cst_11 = arith.constant dense<0.000000e+00> : vector<8x128xf32>
    %23 = vector.multi_reduction <add>, %22, %cst_11 [0] : vector<2x8x128xf32> to vector<8x128xf32>
    %c0_12 = arith.constant 0 : index
    %c0_13 = arith.constant 0 : index
    %c0_14 = arith.constant 0 : index
    %24 = vector.load %arg6[%c0_12, %c0_13, %c0_14] : memref<1x8x128xf32, #tpu.memory_space<vmem>>, vector<1x8x128xf32>
    %25 = vector.shape_cast %23 : vector<8x128xf32> to vector<1x8x128xf32>
    %26 = arith.addf %24, %25 : vector<1x8x128xf32>
    %c0_15 = arith.constant 0 : index
    %c0_16 = arith.constant 0 : index
    %c0_17 = arith.constant 0 : index
    %27 = vector.load %arg6[%c0_15, %c0_16, %c0_17] : memref<1x8x128xf32, #tpu.memory_space<vmem>>, vector<1x8x128xf32>
    tpu.vector_store %arg6[%c0_15, %c0_16, %c0_17], %26 {strides = array<i32>} : memref<1x8x128xf32, #tpu.memory_space<vmem>>, vector<1x8x128xf32>,
    return
  }
  func.func @transform_0(%arg0: i32, %arg1: i32) -> (i32, i32, i32) {
    %c1_i32 = arith.constant 1 : i32
    %0 = arith.muli %arg0, %c1_i32 : i32
    %1 = arith.addi %0, %arg1 : i32
    %c0_i32 = arith.constant 0 : i32
    %c0_i32_0 = arith.constant 0 : i32
    %c0_i32_1 = arith.constant 0 : i32
    return %1, %c0_i32, %c0_i32_0 : i32, i32, i32
  }
  func.func @transform_1(%arg0: i32, %arg1: i32) -> (i32, i32) {
    %c0_i32 = arith.constant 0 : i32
    %c0_i32_0 = arith.constant 0 : i32
    %c0_i32_1 = arith.constant 0 : i32
    return %c0_i32, %c0_i32_0 : i32, i32
  }
  func.func @transform_2(%arg0: i32, %arg1: i32) -> (i32, i32) {
    %c0_i32 = arith.constant 0 : i32
    %c0_i32_0 = arith.constant 0 : i32
    %c0_i32_1 = arith.constant 0 : i32
    return %c0_i32, %c0_i32_0 : i32, i32
  }
  func.func @transform_3(%arg0: i32, %arg1: i32) -> (i32, i32) {
    %c0_i32 = arith.constant 0 : i32
    %c0_i32_0 = arith.constant 0 : i32
    %c0_i32_1 = arith.constant 0 : i32
    return %c0_i32, %c0_i32_0 : i32, i32
  }
  func.func @transform_4(%arg0: i32, %arg1: i32) -> (i32, i32, i32) {
    %c0_i32 = arith.constant 0 : i32
    %c0_i32_0 = arith.constant 0 : i32
    %c0_i32_1 = arith.constant 0 : i32
    return %arg0, %c0_i32, %c0_i32_0 : i32, i32, i32
  }
}

</mosaic_0001>

<bundles_post_ra>
// kernel: tpu_custom_call.1
= control target key start
LH: loop header
LB: loop body
LE: loop exit
PB: predicated region body
PF: predicated region fallthrough
CT: control target
= control target key end

     0   :  { %9 = vsyncpa [#allocation3], 0  ;;  %s605_s0 = inlined_call_operand.vmem [shape: bf16[1,16,128], index: 0, kind: input, shape index: {}]   ;;  %s606_s1 = inlined_call_operand.vmem [shape: bf16[32,16], index: 1, kind: input, shape index: {}]   ;;  %s607_s2 = inlined_call_operand.hbm [shape: bf16[128,128], index: 2, kind: input, shape index: {}]   ;;  %s608_s3 = inlined_call_operand.hbm [shape: bf16[128,128], index: 3, kind: input, shape index: {}]   ;;  %s609_s4 = inlined_call_operand.hbm [shape: f32[1,8,128], index: 4, kind: output, shape index: {}]  }
   0x1   :  { %10 = vsyncpa [#allocation6], 0 }
   0x2   :  { %11 = vsyncpa [#allocation4], 0  ;;  %s27_s17 = sshll.u32 %s607_s2, 4  ;;  %s555_s18 = smov [#allocation2]   ;;  %s28_s17 = int_to_ptr.hbm [resolvable:$true] %s27_s17 }
   0x3   :  { %s29_s19 = sshll.u32 %s555_s18, 4  ;;  %s40_s22 = sshll.u32 %s608_s3, 4  ;;  %s30_s19 = int_to_ptr.vmem [resolvable:$true] %s29_s19  ;;  %s41_s22 = int_to_ptr.hbm [resolvable:$true] %s40_s22 }
   0x4   :  { %s556_s23 = smov 64   ;;  %s557_s24 = smov 4  }
   0x5   :  { %35 = dma.hbm_to_vmem [thread:$0]  %s28_s17, 1024, %s30_s19, [#allocation3], %s556_s23, %s556_s23, %s557_s24  }
   0x6   :  { %s558_s25 = smov [#allocation5]  }
   0x7   :  { %s42_s26 = sshll.u32 %s558_s25, 4  ;;  %s43_s26 = int_to_ptr.vmem [resolvable:$true] %s42_s26 }
   0x8   :  { %48 = dma.hbm_to_vmem [thread:$0]  %s41_s22, 1024, %s43_s26, [#allocation6], %s556_s23, %s556_s23, %s557_s24  }
   0x9   :  { %549 = dma.done.wait [#allocation3], 1024  }
   0xa   :  { %550 = vsyncadd [#allocation3], 4294966272 }
   0xb   :  { %551 = dma.done.wait [#allocation6], 1024  }
   0xc   :  { %552 = vsyncadd [#allocation6], 4294966272  ;;  %v432_v0 = vld [vmem:[%s605_s0] sm:$0xff]  ;;  %v442_v2 = vld [vmem:[#allocation2 + $0x38] sm:$0xff]  ;;  %vm98_vm0 = vcmask 130048   ;;  %s337_s7 = sshll.u32 %s609_s4, 4  ;;  %s338_s7 = int_to_ptr.hbm [resolvable:$true] %s337_s7 }
   0xd   :  { %v433_v1 = vld [vmem:[%s606_s1] sm:$0xff]  ;;  %v450_v3 = vld [vmem:[#allocation5 + $0x38] sm:$0xff]  ;;  %112 = vmatpush.bf16.msra.mxu0 %v432_v0  ;;  %190 = vmatpush.bf16.msra.mxu1 %v442_v2  ;;  %v441_v4 = vld [vmem:[#allocation2 + $0x30] sm:$0xff] }
   0xe   :  { %v449_v5 = vld [vmem:[#allocation5 + $0x30] sm:$0xff]  ;;  %451 = vmatpush.bf16.msra.mxu3 %v442_v2  ;;  %459 = vmatpush.bf16.msra.mxu2 %v450_v3  ;;  %v440_v6 = vld [vmem:[#allocation2 + $0x28] sm:$0xff]  ;;  %v439_v8 = vld [vmem:[#allocation2 + $0x20] sm:$0xff] }
   0xf   :  { %v448_v7 = vld [vmem:[#allocation5 + $0x28] sm:$0xff]  ;;  %v447_v9 = vld [vmem:[#allocation5 + $0x20] sm:$0xff]  ;;  %v438_v10 = vld [vmem:[#allocation2 + $0x18] sm:$0xff] }
  0x10   :  { %366 = vmatmul.msk.bf16.vlgmr.msra.gmra.mxu0 %vm98_vm0, %v433_v1  ;;  %v446_v11 = vld [vmem:[#allocation5 + $0x18] sm:$0xff]  ;;  %v434_v12 = vld [vmem:[%s606_s1 + $0x8] sm:$0xff]  ;;  %v437_v13 = vld [vmem:[#allocation2 + $0x10] sm:$0xff]  ;;  %s559_s1 = smov [#allocation7]  }
  0x11   :  { %273 = vmatpush.bf16.msrb.mxu0 %v450_v3  ;;  %191 = vmatpush.bf16.msra.mxu1 %v441_v4  ;;  %v445_v14 = vld [vmem:[#allocation5 + $0x10] sm:$0xff]  ;;  %v436_v15 = vld [vmem:[#allocation2 + $0x8] sm:$0xff]  ;;  %v435_v17 = vld [vmem:[#allocation2] sm:$0xff]  ;;  %s335_s30 = sshll.u32 %s559_s1, 4  ;;  %s336_s30 = int_to_ptr.vmem [resolvable:$true] %s335_s30 }
  0x12   :  { %452 = vmatpush.bf16.msra.mxu3 %v441_v4  ;;  %460 = vmatpush.bf16.msra.mxu2 %v449_v5  ;;  %v444_v16 = vld [vmem:[#allocation5 + $0x8] sm:$0xff]  ;;  %v443_v18 = vld [vmem:[#allocation5] sm:$0xff] }
  0x15   :  { %274 = vmatpush.bf16.msrb.mxu0 %v449_v5  ;;  %192 = vmatpush.bf16.msra.mxu1 %v440_v6 }
  0x16   :  { %453 = vmatpush.bf16.msra.mxu3 %v440_v6  ;;  %461 = vmatpush.bf16.msra.mxu2 %v448_v7 }
  0x19   :  { %275 = vmatpush.bf16.msrb.mxu0 %v448_v7  ;;  %193 = vmatpush.bf16.msra.mxu1 %v439_v8 }
  0x1a   :  { %454 = vmatpush.bf16.msra.mxu3 %v439_v8  ;;  %462 = vmatpush.bf16.msra.mxu2 %v447_v9 }
  0x1d   :  { %276 = vmatpush.bf16.msrb.mxu0 %v447_v9  ;;  %194 = vmatpush.bf16.msra.mxu1 %v438_v10 }
  0x1e   :  { %455 = vmatpush.bf16.msra.mxu3 %v438_v10  ;;  %463 = vmatpush.bf16.msra.mxu2 %v446_v11 }
  0x20   :  { %367 = vmatmul.msk.bf16.gmra.mxu0 %vm98_vm0, %v434_v12 }
  0x21   :  { %277 = vmatpush.bf16.msrb.mxu0 %v446_v11  ;;  %195 = vmatpush.bf16.msra.mxu1 %v437_v13 }
  0x22   :  { %456 = vmatpush.bf16.msra.mxu3 %v437_v13  ;;  %464 = vmatpush.bf16.msra.mxu2 %v445_v14 }
  0x25   :  { %278 = vmatpush.bf16.msrb.mxu0 %v445_v14  ;;  %196 = vmatpush.bf16.msra.mxu1 %v436_v15 }
  0x26   :  { %457 = vmatpush.bf16.msra.mxu3 %v436_v15  ;;  %465 = vmatpush.bf16.msra.mxu2 %v444_v16 }
  0x29   :  { %279 = vmatpush.bf16.msrb.mxu0 %v444_v16  ;;  %197 = vmatpush.bf16.msra.mxu1 %v435_v17 }
  0x2a   :  { %458 = vmatpush.bf16.msra.mxu3 %v435_v17  ;;  %466 = vmatpush.bf16.msra.mxu2 %v443_v18 }
  0x2d   :  { %280 = vmatpush.bf16.msrb.mxu0 %v443_v18 }
  0x8d   :  { %v114_v19 = vpop.f32.mrf.mxu0 }
  0x95   :  { %v116_v20 = vpop.f32.mrf.mxu0 }
  0x96   :  { %v124_v21 = vpack.c.bf16 %v116_v20, %v114_v19 }
  0x98   :  { %198 = vmatmul.bf16.vlgmr.msra.gmra.mxu1 %v124_v21  ;;  %281 = vmatmul.bf16.vlgmr.msrb.gmra.mxu0 %v124_v21 }
  0x9d   :  { %v119_v22 = vpop.f32.mrf.mxu0 }
  0xa5   :  { %v121_v23 = vpop.f32.mrf.mxu0 }
  0xa6   :  { %v125_v24 = vpack.c.bf16 %v121_v23, %v119_v22 }
  0xa8   :  { %203 = vmatmul.bf16.vlgmr.msra.gmra.mxu3 %v125_v24  ;;  %286 = vmatmul.bf16.vlgmr.msra.gmra.mxu2 %v125_v24 }
 0x115   :  { %v199_v25 = vpop.f32.mrf.mxu1  ;;  %v282_v26 = vpop.f32.mrf.mxu0 }
 0x11d   :  { %v201_v34 = vpop.f32.mrf.mxu1  ;;  %v284_v35 = vpop.f32.mrf.mxu0 }
 0x12b   :  { %v204_v27 = vpop.f32.mrf.mxu3  ;;  %v287_v28 = vpop.f32.mrf.mxu2 }
 0x12c   :  { %v294_v29 = vadd.f32 %v282_v26, %v204_v27  ;;  %v292_v30 = vsub.f32 %v199_v25, %v287_v28 }
 0x12e   :  { %v298_v31 = vmul.f32 %v294_v29, %v294_v29  ;;  %v296_v32 = vmul.f32 %v292_v30, %v292_v30 }
 0x130   :  { %v300_v33 = vadd.f32 %v298_v31, %v296_v32 }
 0x132   :  { %473 = vrsqrt.f32 %v300_v33  ;;  %vm309_vm1 = vcmp.eq.f32.partialorder %v300_v33, inf  ;;  %v312_v58 = vand.u32 2147483648, %v300_v33  ;;  %vm311_vm3 = vcmp.eq.f32.partialorder %v300_v33, 0.0 }
 0x133   :  { %v206_v36 = vpop.f32.mrf.mxu3  ;;  %v289_v37 = vpop.f32.mrf.mxu2 }
 0x134   :  { %v295_v38 = vadd.f32 %v284_v35, %v206_v36  ;;  %v293_v39 = vsub.f32 %v201_v34, %v289_v37 }
 0x136   :  { %v299_v40 = vmul.f32 %v295_v38, %v295_v38  ;;  %v297_v41 = vmul.f32 %v293_v39, %v293_v39 }
 0x138   :  { %v474_v42 = vpop.eup %473  ;;  %v301_v43 = vadd.f32 %v299_v40, %v297_v41 }
 0x139   :  { %v303_v44 = vmul.f32 %v474_v42, %v300_v33 }
 0x13a   :  { %475 = vrsqrt.f32 %v301_v43  ;;  %vm321_vm2 = vcmp.eq.f32.partialorder %v301_v43, inf  ;;  %v324_v59 = vand.u32 2147483648, %v301_v43  ;;  %vm323_vm4 = vcmp.eq.f32.partialorder %v301_v43, 0.0 }
 0x13b   :  { %v304_v45 = vmul.f32 %v474_v42, %v303_v44 }
 0x13d   :  { %v305_v46 = vmul.f32 0.5, %v304_v45 }
 0x13f   :  { %v306_v47 = vsub.f32 1.5, %v305_v46 }
 0x140   :  { %v476_v48 = vpop.eup %475 }
 0x141   :  { %v315_v49 = vmul.f32 %v476_v48, %v301_v43  ;;  %v307_v50 = vmul.f32 %v474_v42, %v306_v47 }
 0x143   :  { %v316_v51 = vmul.f32 %v476_v48, %v315_v49  ;;  %v308_v53 = vmul.f32 %v307_v50, %v300_v33 }
 0x145   :  { %v317_v52 = vmul.f32 0.5, %v316_v51  ;;  %v310_v56 = vsel %vm309_vm1, %v300_v33, %v308_v53 }
 0x146   :  { %v313_v61 = vsel %vm311_vm3, %v312_v58, %v310_v56 }
 0x147   :  { %v318_v54 = vsub.f32 1.5, %v317_v52 }
 0x149   :  { %v319_v55 = vmul.f32 %v476_v48, %v318_v54 }
 0x14b   :  { %v320_v57 = vmul.f32 %v319_v55, %v301_v43 }
 0x14d   :  { %v322_v60 = vsel %vm321_vm2, %v301_v43, %v320_v57 }
 0x14e   :  { %v325_v62 = vsel %vm323_vm4, %v324_v59, %v322_v60 }
 0x14f   :  { %v326_v63 = vadd.f32 %v325_v62, %v313_v61 }
 0x151   :  { %329 = vst [vmem:[#allocation7] sm:$0xff] %v326_v63 }
 0x152   :  { %340 = dma.vmem_to_hbm [thread:$0]  %s336_s30, 128, %s338_s7, [#allocation4]  }
 0x153   :  { %553 = dma.done.wait [#allocation4], 128  }
 0x154   :  { %554 = vsyncadd [#allocation4], 4294967168 }
 0x155   :  { %345 = vsyncpa [#allocation3], 1 }
 0x156   :  { %346 = vsyncpa [#allocation6], 1 }
 0x157   :  { %347 = vsyncpa [#allocation4], 1 }

</bundles_post_ra>
